<compile_context>
chip_gen: v5e
topology: v5e:2x2
jax: 0.10.0
libtpu: 0.0.40
codegen_flags: <defaults>
</compile_context>

<pallas_src>
import functools

import jax
import jax.numpy as jnp
from jax.experimental import pallas as pl
from jax.experimental.pallas import tpu as pltpu


# --------------------------------------------------------------------------- helpers
def _round_up(x, m):
    return ((x + m - 1) // m) * m


def _cdiv(a, b):
    return -(-a // b)


def _tpu_generation():
    """Best-effort chip-generation detection (used only for tiling/VMEM heuristics)."""
    try:
        kind = jax.devices()[0].device_kind.lower()
    except Exception:  # pragma: no cover - defensive
        return "unknown"
    if "v7" in kind:
        return "v7x"
    if "v6" in kind:
        return "v6e"
    if "v5" in kind:
        return "v5e"
    if "v4" in kind:
        return "v6e"  # 128 MiB VMEM class; same budget as v5e/v6e
    return "unknown"


def _silu_f32(x):
    # SiLU(x) = x * sigmoid(x) = x / (1 + exp(-x)).
    # One transcendental (exp) + an approx reciprocal on the EUP slot.
    return x * pl.reciprocal(1.0 + jnp.exp(-x), approx=True)


# --------------------------------------------------------------------------- kernel
def _mlp_kernel(n_layers, x_ref, *refs):
    """Fused MLP over one batch tile.

    refs = (w0, b0, w1, b1, ..., w_{L-1}, b_{L-1}, o_ref)
    x_ref: (TILE_B, in_p) bf16; weights bf16 (in_p, out_p); biases f32 (1, out_p);
    o_ref: (TILE_B, out_p) f32.
    """
    o_ref = refs[-1]
    params = refs[:-1]

    h = x_ref[...]  # bf16 activations straight into the MXU
    for li in range(n_layers):
        w = params[2 * li][...]       # (in_p, out_p) bf16, VMEM-resident
        b = params[2 * li + 1][...]   # (1, out_p)   f32,  VMEM-resident
        acc = jnp.dot(h, w, preferred_element_type=jnp.float32) + b
        if li < n_layers - 1:
            h = _silu_f32(acc).astype(jnp.bfloat16)
        else:
            o_ref[...] = acc.astype(o_ref.dtype)


# --------------------------------------------------------------------------- wrapper
def make_mlp(weights, biases, *, max_tile_b=None):
    """Pre-pad / cast parameters once and return a jitted forward function.

    weights: list of (in_i, out_i) float32 arrays (torch Linear weight, transposed)
    biases:  list of (out_i,)      float32 arrays
    """
    n_layers = len(weights)
    in_dim = weights[0].shape[0]
    out_dim = weights[-1].shape[1]
    gen = _tpu_generation()

    # ---- feature-dim padding (per-generation MXU awareness) -------------------
    sizes = [in_dim] + [w.shape[1] for w in weights]

    def _pad_dim(s):
        if gen in ("v6e", "v7x") and s > 128:
            return _round_up(s, 256)   # 2x256x256 MXU: use full tiles when it matters
        return _round_up(s, 128)

    sizes_p = [_pad_dim(s) for s in sizes]

    # ---- pad & cast params once (hoisted out of the per-call path) ------------
    padded_params = []
    for li, (w, b) in enumerate(zip(weights, biases)):
        fi, fo = w.shape
        fip, fop = sizes_p[li], sizes_p[li + 1]
        w_p = jnp.zeros((fip, fop), jnp.bfloat16).at[:fi, :fo].set(
            jnp.asarray(w, jnp.bfloat16))
        b_p = jnp.zeros((1, fop), jnp.float32).at[0, :fo].set(
            jnp.asarray(b, jnp.float32))
        padded_params += [w_p, b_p]
    padded_params = [jax.device_put(p) for p in padded_params]
    param_bytes = sum(p.size * p.dtype.itemsize for p in padded_params)

    # ---- per-generation budgets -----------------------------------------------
    vmem_cap = {"v7x": 56 << 20, "v6e": 100 << 20, "v5e": 100 << 20}.get(gen, 56 << 20)
    if max_tile_b is None:
        max_tile_b = {"v5e": 512, "v6e": 512, "v7x": 256}.get(gen, 256)
    if max(sizes_p) >= 512:
        # Bound live-activation vreg/spill pressure for wide hidden layers.
        max_tile_b = min(max_tile_b, 128)

    in_p, out_p = sizes_p[0], sizes_p[-1]

    @jax.jit
    def _apply_padded(x, *params):
        batch = x.shape[0]

        # ---- batch tiling: 16-aligned (bf16 sublanes), minimal dead rows,
        #      and >= 2 tiles on v7x so both TensorCores get work. --------------
        min_tiles = 2 if (gen == "v7x" and batch >= 32) else 1
        n_tiles = max(_cdiv(batch, max_tile_b), min_tiles)
        tile_b = _round_up(_cdiv(batch, n_tiles), 16)

        # ---- VMEM residency check; shrink tile_b rather than spill ------------
        def _needed(tb):
            io = 2 * tb * in_p * 2 + 2 * tb * out_p * 4          # double-buffered x/out
            act = 3 * tb * max(sizes_p) * 4                      # activation headroom
            return param_bytes + io + act

        while _needed(tile_b) > vmem_cap and tile_b > 16:
            tile_b = max(16, _round_up(tile_b // 2, 16))
            n_tiles = _cdiv(batch, tile_b)
        if _needed(tile_b) > vmem_cap:
            # TODO(synk): weight-streaming fallback for params larger than VMEM.
            raise ValueError(
                f"Padded parameters ({param_bytes/2**20:.1f} MiB) exceed the "
                f"{gen} VMEM budget ({vmem_cap/2**20:.0f} MiB); streaming fallback "
                "not implemented.")

        batch_p = tile_b * n_tiles
        vmem_limit = int(min(max(_needed(tile_b) + (8 << 20), 32 << 20), vmem_cap))

        # ---- pad input (fused under jit) ---------------------------------------
        x_p = jnp.zeros((batch_p, in_p), jnp.bfloat16).at[:batch, :in_dim].set(
            x.astype(jnp.bfloat16))

        # ---- specs --------------------------------------------------------------
        in_specs = [pl.BlockSpec((tile_b, in_p), lambda i: (i, 0))]
        for _ in range(n_layers):
            # Untiled, whole-array VMEM operands: a single resident copy each.
            in_specs.append(pl.BlockSpec(memory_space=pltpu.MemorySpace.VMEM))  # weight
            in_specs.append(pl.BlockSpec(memory_space=pltpu.MemorySpace.VMEM))  # bias
        out_specs = pl.BlockSpec((tile_b, out_p), lambda i: (i, 0))

        flops = 2 * batch_p * sum(sizes_p[i] * sizes_p[i + 1] for i in range(n_layers))
        transcendentals = batch_p * sum(sizes_p[1:-1])          # one exp per hidden elem
        bytes_accessed = batch_p * in_p * 2 + param_bytes + batch_p * out_p * 4

        out_padded = pl.pallas_call(
            functools.partial(_mlp_kernel, n_layers),
            out_shape=jax.ShapeDtypeStruct((batch_p, out_p), jnp.float32),
            grid=(n_tiles,),
            in_specs=in_specs,
            out_specs=out_specs,
            compiler_params=pltpu.CompilerParams(
                dimension_semantics=("parallel",),
                vmem_limit_bytes=vmem_limit,
            ),
            cost_estimate=pl.CostEstimate(
                flops=flops,
                transcendentals=transcendentals,
                bytes_accessed=bytes_accessed,
            ),
        )(x_p, *params)

        # Strip batch / lane padding (kept outside the kernel so the in-kernel store
        # stays lane-dense; the slice is fused by jit).
        return out_padded[:batch, :out_dim]

    def forward(x):
        return _apply_padded(x, *padded_params)

    return forward


# --------------------------------------------------------------------------- params & refs
def init_params(input_size, output_size, hidden_layers, seed=1):
    """Deterministic init matching ANN_topology's layer shapes (weights stored (in, out))."""
    sizes = [input_size] + list(hidden_layers) + [output_size]
    key = jax.random.PRNGKey(seed)
    weights, biases = [], []
    for i in range(len(sizes) - 1):
        fan_in, fan_out = sizes[i], sizes[i + 1]
        key, kw, kb = jax.random.split(key, 3)
        bound = 1.0 / jnp.sqrt(jnp.float32(fan_in))
        w = jax.random.uniform(kw, (fan_in, fan_out), jnp.float32, -bound, bound)
        b = jax.random.uniform(kb, (fan_out,), jnp.float32, -bound, bound)
        weights.append(w)
        biases.append(b)
    return weights, biases


def mlp_reference_bf16(x, weights, biases):
    """Pure-JAX reference using the same numeric recipe as the kernel (bf16 MXU, f32 acc)."""
    h = x.astype(jnp.bfloat16)
    n = len(weights)
    for i, (w, b) in enumerate(zip(weights, biases)):
        acc = jnp.dot(h, w.astype(jnp.bfloat16),
                      preferred_element_type=jnp.float32) + b.astype(jnp.float32)
        if i < n - 1:
            h = (acc * jax.nn.sigmoid(acc)).astype(jnp.bfloat16)
        else:
            h = acc
    return h


def mlp_reference_f32(x, weights, biases):
    """Full-f32 reference matching the PyTorch module exactly."""
    h = x
    n = len(weights)
    for i, (w, b) in enumerate(zip(weights, biases)):
        h = h @ w + b
        if i < n - 1:
            h = h * jax.nn.sigmoid(h)
    return h


# --------------------------------------------------------------------------- main
if __name__ == "__main__":
    # Small shapes consistent with the module: a plain MLP on feature vectors.
    batch = 64
    input_size = 16
    hidden_layers = [32, 32]
    output_size = 8

    key = jax.random.PRNGKey(0)
    x = jax.random.normal(key, (batch, input_size), dtype=jnp.float32)

    weights, biases = init_params(input_size, output_size, hidden_layers, seed=1)

    forward = make_mlp(weights, biases)
    out = jax.block_until_ready(forward(x))
    assert out.shape == (batch, output_size)

    # Tight check against a reference using the same bf16/f32 recipe.
    ref_bf16 = mlp_reference_bf16(x, weights, biases)
    assert jnp.allclose(out, ref_bf16, atol=1e-2, rtol=1e-2), \
        "Pallas MLP mismatch vs bf16 reference"

    # Loose check against the exact f32 module semantics (bf16 quantization error only).
    ref_f32 = mlp_reference_f32(x, weights, biases)
    assert jnp.allclose(out, ref_f32, atol=1e-1, rtol=0), \
        "Pallas MLP mismatch vs f32 reference"

    print("KERNEL_OK")
</pallas_src>

<mosaic_0001>
module attributes {stable_mosaic.version = 11 : i64} {
  func.func @_mlp_kernel(%arg0: i32, %arg1: memref<64x128xbf16, #tpu.memory_space<vmem>>, %arg2: memref<128x128xbf16, #tpu.memory_space<vmem>>, %arg3: memref<1x128xf32, #tpu.memory_space<vmem>>, %arg4: memref<128x128xbf16, #tpu.memory_space<vmem>>, %arg5: memref<1x128xf32, #tpu.memory_space<vmem>>, %arg6: memref<128x128xbf16, #tpu.memory_space<vmem>>, %arg7: memref<1x128xf32, #tpu.memory_space<vmem>>, %arg8: memref<64x128xf32, #tpu.memory_space<vmem>>) attributes {dimension_semantics = [#tpu.dimension_semantics<parallel>], iteration_bounds = array<i64: 1>, scalar_prefetch = 0 : i64, scratch_operands = 0 : i64, tpu.core_type = #tpu.core_type<tc>, window_params = [{transform_indices = @transform_0, window_bounds = array<i64: 64, 128>}, {pipeline_mode = #tpu.pipeline_mode<synchronous>, transform_indices = @transform_1, window_bounds = array<i64: 128, 128>}, {pipeline_mode = #tpu.pipeline_mode<synchronous>, transform_indices = @transform_2, window_bounds = array<i64: 1, 128>}, {pipeline_mode = #tpu.pipeline_mode<synchronous>, transform_indices = @transform_3, window_bounds = array<i64: 128, 128>}, {pipeline_mode = #tpu.pipeline_mode<synchronous>, transform_indices = @transform_4, window_bounds = array<i64: 1, 128>}, {pipeline_mode = #tpu.pipeline_mode<synchronous>, transform_indices = @transform_5, window_bounds = array<i64: 128, 128>}, {pipeline_mode = #tpu.pipeline_mode<synchronous>, transform_indices = @transform_6, window_bounds = array<i64: 1, 128>}, {transform_indices = @transform_7, window_bounds = array<i64: 64, 128>}]} {
    %c0 = arith.constant 0 : index
    %c0_0 = arith.constant 0 : index
    %0 = vector.load %arg1[%c0, %c0_0] : memref<64x128xbf16, #tpu.memory_space<vmem>>, vector<64x128xbf16>
    %c0_1 = arith.constant 0 : index
    %c0_2 = arith.constant 0 : index
    %1 = vector.load %arg2[%c0_1, %c0_2] : memref<128x128xbf16, #tpu.memory_space<vmem>>, vector<128x128xbf16>
    %c0_3 = arith.constant 0 : index
    %c0_4 = arith.constant 0 : index
    %2 = vector.load %arg3[%c0_3, %c0_4] : memref<1x128xf32, #tpu.memory_space<vmem>>, vector<1x128xf32>
    %cst = arith.constant dense<0.000000e+00> : vector<64x128xf32>
    %3 = tpu.matmul %0, %1, %cst {dimension_numbers = #tpu.dot_dimension_numbers<[1], [0], [0], [1], [0, 0, 1, 1], [], []>} : vector<64x128xbf16>, vector<128x128xbf16>, vector<64x128xf32> -> vector<64x128xf32>
    %4 = vector.broadcast %2 : vector<1x128xf32> to vector<64x128xf32>
    %5 = arith.addf %3, %4 : vector<64x128xf32>
    %cst_5 = arith.constant 0.000000e+00 : f32
    %6 = vector.broadcast %cst_5 : f32 to vector<64x128xf32>
    %7 = arith.subf %6, %5 : vector<64x128xf32>
    %8 = math.exp %7 : vector<64x128xf32>
    %cst_6 = arith.constant 1.000000e+00 : f32
    %9 = vector.broadcast %cst_6 : f32 to vector<64x128xf32>
    %10 = arith.addf %9, %8 : vector<64x128xf32>
    %11 = tpu.reciprocal %10 {approx = true} : vector<64x128xf32> -> vector<64x128xf32>
    %12 = arith.mulf %5, %11 : vector<64x128xf32>
    %13 = arith.truncf %12 : vector<64x128xf32> to vector<64x128xbf16>
    %c0_7 = arith.constant 0 : index
    %c0_8 = arith.constant 0 : index
    %14 = vector.load %arg4[%c0_7, %c0_8] : memref<128x128xbf16, #tpu.memory_space<vmem>>, vector<128x128xbf16>
    %c0_9 = arith.constant 0 : index
    %c0_10 = arith.constant 0 : index
    %15 = vector.load %arg5[%c0_9, %c0_10] : memref<1x128xf32, #tpu.memory_space<vmem>>, vector<1x128xf32>
    %cst_11 = arith.constant dense<0.000000e+00> : vector<64x128xf32>
    %16 = tpu.matmul %13, %14, %cst_11 {dimension_numbers = #tpu.dot_dimension_numbers<[1], [0], [0], [1], [0, 0, 1, 1], [], []>} : vector<64x128xbf16>, vector<128x128xbf16>, vector<64x128xf32> -> vector<64x128xf32>
    %17 = vector.broadcast %15 : vector<1x128xf32> to vector<64x128xf32>
    %18 = arith.addf %16, %17 : vector<64x128xf32>
    %cst_12 = arith.constant 0.000000e+00 : f32
    %19 = vector.broadcast %cst_12 : f32 to vector<64x128xf32>
    %20 = arith.subf %19, %18 : vector<64x128xf32>
    %21 = math.exp %20 : vector<64x128xf32>
    %cst_13 = arith.constant 1.000000e+00 : f32
    %22 = vector.broadcast %cst_13 : f32 to vector<64x128xf32>
    %23 = arith.addf %22, %21 : vector<64x128xf32>
    %24 = tpu.reciprocal %23 {approx = true} : vector<64x128xf32> -> vector<64x128xf32>
    %25 = arith.mulf %18, %24 : vector<64x128xf32>
    %26 = arith.truncf %25 : vector<64x128xf32> to vector<64x128xbf16>
    %c0_14 = arith.constant 0 : index
    %c0_15 = arith.constant 0 : index
    %27 = vector.load %arg6[%c0_14, %c0_15] : memref<128x128xbf16, #tpu.memory_space<vmem>>, vector<128x128xbf16>
    %c0_16 = arith.constant 0 : index
    %c0_17 = arith.constant 0 : index
    %28 = vector.load %arg7[%c0_16, %c0_17] : memref<1x128xf32, #tpu.memory_space<vmem>>, vector<1x128xf32>
    %cst_18 = arith.constant dense<0.000000e+00> : vector<64x128xf32>
    %29 = tpu.matmul %26, %27, %cst_18 {dimension_numbers = #tpu.dot_dimension_numbers<[1], [0], [0], [1], [0, 0, 1, 1], [], []>} : vector<64x128xbf16>, vector<128x128xbf16>, vector<64x128xf32> -> vector<64x128xf32>
    %30 = vector.broadcast %28 : vector<1x128xf32> to vector<64x128xf32>
    %31 = arith.addf %29, %30 : vector<64x128xf32>
    %c0_19 = arith.constant 0 : index
    %c0_20 = arith.constant 0 : index
    %32 = vector.load %arg8[%c0_19, %c0_20] : memref<64x128xf32, #tpu.memory_space<vmem>>, vector<64x128xf32>
    tpu.vector_store %arg8[%c0_19, %c0_20], %31 {strides = array<i32>} : memref<64x128xf32, #tpu.memory_space<vmem>>, vector<64x128xf32>,
    return
  }
  func.func @transform_0(%arg0: i32) -> (i32, i32) {
    %c0_i32 = arith.constant 0 : i32
    %c0_i32_0 = arith.constant 0 : i32
    return %arg0, %c0_i32 : i32, i32
  }
  func.func @transform_1(%arg0: i32) -> (i32, i32) {
    %c0_i32 = arith.constant 0 : i32
    %c0_i32_0 = arith.constant 0 : i32
    %c0_i32_1 = arith.constant 0 : i32
    return %c0_i32, %c0_i32_0 : i32, i32
  }
  func.func @transform_2(%arg0: i32) -> (i32, i32) {
    %c0_i32 = arith.constant 0 : i32
    %c0_i32_0 = arith.constant 0 : i32
    %c0_i32_1 = arith.constant 0 : i32
    return %c0_i32, %c0_i32_0 : i32, i32
  }
  func.func @transform_3(%arg0: i32) -> (i32, i32) {
    %c0_i32 = arith.constant 0 : i32
    %c0_i32_0 = arith.constant 0 : i32
    %c0_i32_1 = arith.constant 0 : i32
    return %c0_i32, %c0_i32_0 : i32, i32
  }
  func.func @transform_4(%arg0: i32) -> (i32, i32) {
    %c0_i32 = arith.constant 0 : i32
    %c0_i32_0 = arith.constant 0 : i32
    %c0_i32_1 = arith.constant 0 : i32
    return %c0_i32, %c0_i32_0 : i32, i32
  }
  func.func @transform_5(%arg0: i32) -> (i32, i32) {
    %c0_i32 = arith.constant 0 : i32
    %c0_i32_0 = arith.constant 0 : i32
    %c0_i32_1 = arith.constant 0 : i32
    return %c0_i32, %c0_i32_0 : i32, i32
  }
  func.func @transform_6(%arg0: i32) -> (i32, i32) {
    %c0_i32 = arith.constant 0 : i32
    %c0_i32_0 = arith.constant 0 : i32
    %c0_i32_1 = arith.constant 0 : i32
    return %c0_i32, %c0_i32_0 : i32, i32
  }
  func.func @transform_7(%arg0: i32) -> (i32, i32) {
    %c0_i32 = arith.constant 0 : i32
    %c0_i32_0 = arith.constant 0 : i32
    return %arg0, %c0_i32 : i32, i32
  }
}

</mosaic_0001>

<bundles_post_ra>
// kernel: _apply_padded.1
= control target key start
LH: loop header
LB: loop body
LE: loop exit
PB: predicated region body
PF: predicated region fallthrough
CT: control target
= control target key end

     0   :  { %12 = vsyncpa [#allocation3], 0  ;;  %s726_s27 = smov [#allocation2]   ;;  %s727_s29 = smov 64   ;;  %s875_s0 = inlined_call_operand.vmem [shape: bf16[64,128], index: 0, kind: input, shape index: {}]   ;;  %s876_s1 = inlined_call_operand.vmem [shape: bf16[128,128], index: 1, kind: input, shape index: {}]   ;;  %s877_s2 = inlined_call_operand.vmem [shape: f32[1,128], index: 2, kind: input, shape index: {}]   ;;  %s878_s3 = inlined_call_operand.vmem [shape: bf16[128,128], index: 3, kind: input, shape index: {}]   ;;  %s879_s4 = inlined_call_operand.vmem [shape: f32[1,128], index: 4, kind: input, shape index: {}]   ;;  %s880_s5 = inlined_call_operand.hbm [shape: bf16[128,128], index: 5, kind: input, shape index: {}]   ;;  %s881_s6 = inlined_call_operand.vmem [shape: f32[1,128], index: 6, kind: input, shape index: {}]   ;;  %s882_s7 = inlined_call_operand.vmem [shape: f32[64,128], index: 7, kind: output, shape index: {}]  }
   0x1   :  { %s27_s26 = sshll.u32 %s880_s5, 4  ;;  %s29_s28 = sshll.u32 %s726_s27, 4  ;;  %s28_s26 = int_to_ptr.hbm [resolvable:$true] %s27_s26  ;;  %s30_s28 = int_to_ptr.vmem [resolvable:$true] %s29_s28 }
   0x2   :  { %s728_s30 = smov 4  }
   0x3   :  { %35 = dma.hbm_to_vmem [thread:$0]  %s28_s26, 1024, %s30_s28, [#allocation3], %s727_s29, %s727_s29, %s728_s30  }
   0x4   :  { %724 = dma.done.wait [#allocation3], 1024  }
   0x5   :  { %725 = vsyncadd [#allocation3], 4294966272  ;;  %v605_v0 = vld [vmem:[%s876_s1 + $0x38] sm:$0xff]  ;;  %v604_v1 = vld [vmem:[%s876_s1 + $0x30] sm:$0xff] }
   0x6   :  { %142 = vmatpush.bf16.msra.mxu0 %v605_v0  ;;  %622 = vmatpush.bf16.msra.mxu3 %v605_v0  ;;  %v603_v2 = vld [vmem:[%s876_s1 + $0x28] sm:$0xff]  ;;  %v602_v3 = vld [vmem:[%s876_s1 + $0x20] sm:$0xff]  ;;  %v601_v4 = vld [vmem:[%s876_s1 + $0x18] sm:$0xff] }
   0x7   :  { %v600_v5 = vld [vmem:[%s876_s1 + $0x10] sm:$0xff]  ;;  %v599_v6 = vld [vmem:[%s876_s1 + $0x8] sm:$0xff]  ;;  %v598_v7 = vld [vmem:[%s876_s1] sm:$0xff] }
   0x8   :  { %v594_v8 = vld [vmem:[%s875_s0] sm:$0xff]  ;;  %v595_v9 = vld [vmem:[%s875_s0 + $0x8] sm:$0xff]  ;;  %v596_v10 = vld [vmem:[%s875_s0 + $0x10] sm:$0xff] }
   0x9   :  { %v597_v11 = vld [vmem:[%s875_s0 + $0x18] sm:$0xff]  ;;  %v612_v13 = vld [vmem:[%s878_s3 + $0x30] sm:$0xff]  ;;  %v611_v14 = vld [vmem:[%s878_s3 + $0x28] sm:$0xff] }
   0xa   :  { %143 = vmatpush.bf16.msra.mxu0 %v604_v1  ;;  %623 = vmatpush.bf16.msra.mxu3 %v604_v1  ;;  %v613_v12 = vld [vmem:[%s878_s3 + $0x38] sm:$0xff]  ;;  %v610_v15 = vld [vmem:[%s878_s3 + $0x20] sm:$0xff]  ;;  %v608_v17 = vld [vmem:[%s878_s3 + $0x10] sm:$0xff] }
   0xb   :  { %291 = vmatpush.bf16.msra.mxu1 %v613_v12  ;;  %v609_v16 = vld [vmem:[%s878_s3 + $0x18] sm:$0xff]  ;;  %v607_v18 = vld [vmem:[%s878_s3 + $0x8] sm:$0xff]  ;;  %v633_v19 = vld [vmem:[%s877_s2] ss:$0 sm:$0xff] }
   0xc   :  { %v606_v20 = vld [vmem:[%s878_s3] sm:$0xff] }
   0xe   :  { %144 = vmatpush.bf16.msra.mxu0 %v603_v2  ;;  %624 = vmatpush.bf16.msra.mxu3 %v603_v2 }
   0xf   :  { %292 = vmatpush.bf16.msra.mxu1 %v612_v13 }
  0x12   :  { %145 = vmatpush.bf16.msra.mxu0 %v602_v3  ;;  %625 = vmatpush.bf16.msra.mxu3 %v602_v3 }
  0x13   :  { %293 = vmatpush.bf16.msra.mxu1 %v611_v14 }
  0x16   :  { %146 = vmatpush.bf16.msra.mxu0 %v601_v4  ;;  %626 = vmatpush.bf16.msra.mxu3 %v601_v4 }
  0x17   :  { %294 = vmatpush.bf16.msra.mxu1 %v610_v15 }
  0x1a   :  { %147 = vmatpush.bf16.msra.mxu0 %v600_v5  ;;  %627 = vmatpush.bf16.msra.mxu3 %v600_v5 }
  0x1b   :  { %295 = vmatpush.bf16.msra.mxu1 %v609_v16 }
  0x1e   :  { %148 = vmatpush.bf16.msra.mxu0 %v599_v6  ;;  %628 = vmatpush.bf16.msra.mxu3 %v599_v6 }
  0x1f   :  { %296 = vmatpush.bf16.msra.mxu1 %v608_v17 }
  0x22   :  { %149 = vmatpush.bf16.msra.mxu0 %v598_v7  ;;  %629 = vmatpush.bf16.msra.mxu3 %v598_v7 }
  0x23   :  { %297 = vmatpush.bf16.msra.mxu1 %v607_v18 }
  0x25   :  { %150 = vmatmul.bf16.vlgmr.msra.gmra.mxu0 %v594_v8  ;;  %155 = vmatmul.bf16.vlgmr.msra.gmra.mxu3 %v595_v9 }
  0x27   :  { %298 = vmatpush.bf16.msra.mxu1 %v606_v20 }
  0x35   :  { %160 = vmatmul.bf16.gmra.mxu3 %v596_v10 }
  0x45   :  { %165 = vmatmul.bf16.gmra.mxu3 %v597_v11 }
  0xa2   :  { %v151_v21 = vpop.f32.mrf.mxu0 }
  0xa3   :  { %v152_v22 = vadd.f32 %v633_v19, %v151_v21 }
  0xa5   :  { %v171_v23 = vsub.f32 0.0, %v152_v22 }
  0xa7   :  { %v179_v24 = vmul.f32 1.442695, %v171_v23 }
  0xa8   :  { %v156_v25 = vpop.f32.mrf.mxu3 }
  0xa9   :  { %636 = vpow2.f32 %v179_v24  ;;  %v157_v29 = vadd.f32 %v633_v19, %v156_v25  ;;  %v621_v25 = vld [vmem:[#allocation2 + $0x38] sm:$0xff] }
  0xaa   :  { %v153_v26 = vpop.f32.mrf.mxu0  ;;  %440 = vmatpush.bf16.msra.mxu2 %v621_v25 }
  0xab   :  { %v154_v27 = vadd.f32 %v633_v19, %v153_v26  ;;  %v173_v34 = vsub.f32 0.0, %v157_v29  ;;  %v620_v26 = vld [vmem:[#allocation2 + $0x30] sm:$0xff] }
  0xad   :  { %v172_v28 = vsub.f32 0.0, %v154_v27  ;;  %v183_v39 = vmul.f32 1.442695, %v173_v34 }
  0xae   :  { %441 = vmatpush.bf16.msra.mxu2 %v620_v26 }
  0xaf   :  { %v181_v30 = vmul.f32 1.442695, %v172_v28  ;;  %v637_v32 = vpop.eup %636  ;;  %v618_v28 = vld [vmem:[#allocation2 + $0x20] sm:$0xff] }
  0xb0   :  { %v158_v31 = vpop.f32.mrf.mxu3  ;;  %v195_v36 = vadd.f32 1.0, %v637_v32  ;;  %v838_v32 = vld [vmem:[%s879_s4] ss:$0 sm:$0xff] }
  0xb1   :  { %638 = vpow2.f32 %v181_v30  ;;  %v159_v33 = vadd.f32 %v633_v19, %v158_v31  ;;  %v616_v30 = vld [vmem:[#allocation2 + $0x10] sm:$0xff]  ;;  %v615_v31 = vld [vmem:[#allocation2 + $0x8] sm:$0xff] }
  0xb2   :  { %640 = vrcp.f32 %v195_v36 }
  0xb3   :  { %v174_v35 = vsub.f32 0.0, %v159_v33 }
  0xb5   :  { %v185_v37 = vmul.f32 1.442695, %v174_v35 }
  0xb7   :  { %v639_v38 = vpop.eup %638  ;;  %642 = vpow2.f32 %v185_v37 }
  0xb8   :  { %v196_v40 = vadd.f32 1.0, %v639_v38  ;;  %v161_v41 = vpop.f32.mrf.mxu3  ;;  %v641_v42 = vpop.eup %640 }
  0xb9   :  { %v162_v44 = vadd.f32 %v633_v19, %v161_v41  ;;  %v211_v48 = vmul.f32 %v641_v42, %v152_v22 }
  0xba   :  { %644 = vrcp.f32 %v196_v40 }
  0xbb   :  { %646 = vpow2.f32 %v183_v39  ;;  %v175_v52 = vsub.f32 0.0, %v162_v44 }
  0xbd   :  { %v643_v43 = vpop.eup %642  ;;  %v187_v57 = vmul.f32 1.442695, %v175_v52 }
  0xbe   :  { %v198_v51 = vadd.f32 1.0, %v643_v43 }
  0xc0   :  { %v645_v45 = vpop.eup %644  ;;  %v163_v46 = vpop.f32.mrf.mxu3  ;;  %648 = vrcp.f32 %v198_v51 }
  0xc1   :  { %v647_v47 = vpop.eup %646  ;;  %v212_v49 = vmul.f32 %v645_v45, %v154_v27  ;;  %v164_v50 = vadd.f32 %v633_v19, %v163_v46  ;;  %v619_v27 = vld [vmem:[#allocation2 + $0x28] sm:$0xff] }
  0xc2   :  { %v197_v55 = vadd.f32 1.0, %v647_v47  ;;  %442 = vmatpush.bf16.msra.mxu2 %v619_v27 }
  0xc3   :  { %v176_v53 = vsub.f32 0.0, %v164_v50  ;;  %v219_v54 = vpack.c.bf16 %v212_v49, %v211_v48 }
  0xc4   :  { %650 = vrcp.f32 %v197_v55 }
  0xc5   :  { %v189_v56 = vmul.f32 1.442695, %v176_v53  ;;  %299 = vmatmul.bf16.vlgmr.msra.gmra.mxu1 %v219_v54 }
  0xc6   :  { %v649_v59 = vpop.eup %648  ;;  %443 = vmatpush.bf16.msra.mxu2 %v618_v28 }
  0xc7   :  { %652 = vpow2.f32 %v189_v56  ;;  %v214_v62 = vmul.f32 %v649_v59, %v159_v33  ;;  %v614_v33 = vld [vmem:[#allocation2] sm:$0xff] }
  0xc8   :  { %v166_v58 = vpop.f32.mrf.mxu3  ;;  %654 = vpow2.f32 %v187_v57 }
  0xc9   :  { %v167_v63 = vadd.f32 %v633_v19, %v166_v58 }
  0xca   :  { %v651_v60 = vpop.eup %650 }
  0xcb   :  { %v213_v2 = vmul.f32 %v651_v60, %v157_v29  ;;  %v177_v5 = vsub.f32 0.0, %v167_v63  ;;  %v617_v29 = vld [vmem:[#allocation2 + $0x18] sm:$0xff] }
  0xcc   :  { %444 = vmatpush.bf16.msra.mxu2 %v617_v29 }
  0xcd   :  { %v653_v61 = vpop.eup %652  ;;  %v220_v7 = vpack.c.bf16 %v214_v62, %v213_v2  ;;  %v191_v10 = vmul.f32 1.442695, %v177_v5 }
  0xce   :  { %v655_v1 = vpop.eup %654  ;;  %v200_v4 = vadd.f32 1.0, %v653_v61 }
  0xcf   :  { %v199_v8 = vadd.f32 1.0, %v655_v1 }
  0xd0   :  { %v168_v0 = vpop.f32.mrf.mxu3  ;;  %656 = vrcp.f32 %v200_v4  ;;  %445 = vmatpush.bf16.msra.mxu2 %v616_v30 }
  0xd1   :  { %v169_v3 = vadd.f32 %v633_v19, %v168_v0  ;;  %658 = vrcp.f32 %v199_v8 }
  0xd3   :  { %v178_v6 = vsub.f32 0.0, %v169_v3 }
  0xd4   :  { %446 = vmatpush.bf16.msra.mxu2 %v615_v31 }
  0xd5   :  { %v193_v9 = vmul.f32 1.442695, %v178_v6  ;;  %304 = vmatmul.bf16.gmra.mxu1 %v220_v7 }
  0xd6   :  { %v657_v11 = vpop.eup %656 }
  0xd7   :  { %660 = vpow2.f32 %v193_v9  ;;  %v659_v12 = vpop.eup %658  ;;  %v216_v14 = vmul.f32 %v657_v11, %v164_v50 }
  0xd8   :  { %662 = vpow2.f32 %v191_v10  ;;  %v215_v16 = vmul.f32 %v659_v12, %v162_v44  ;;  %447 = vmatpush.bf16.msra.mxu2 %v614_v33 }
  0xda   :  { %v221_v18 = vpack.c.bf16 %v216_v14, %v215_v16 }
  0xdd   :  { %v661_v13 = vpop.eup %660 }
  0xde   :  { %v663_v15 = vpop.eup %662  ;;  %v202_v17 = vadd.f32 1.0, %v661_v13 }
  0xdf   :  { %v201_v19 = vadd.f32 1.0, %v663_v15 }
  0xe0   :  { %664 = vrcp.f32 %v202_v17 }
  0xe1   :  { %666 = vrcp.f32 %v201_v19 }
  0xe5   :  { %309 = vmatmul.bf16.gmra.mxu1 %v221_v18 }
  0xe6   :  { %v665_v20 = vpop.eup %664 }
  0xe7   :  { %v667_v21 = vpop.eup %666  ;;  %v218_v22 = vmul.f32 %v665_v20, %v169_v3 }
  0xe8   :  { %v217_v23 = vmul.f32 %v667_v21, %v167_v63 }
  0xea   :  { %v222_v24 = vpack.c.bf16 %v218_v22, %v217_v23 }
  0xf5   :  { %314 = vmatmul.bf16.gmra.mxu1 %v222_v24 }
 0x142   :  { %v300_v34 = vpop.f32.mrf.mxu1 }
 0x143   :  { %v301_v35 = vadd.f32 %v838_v32, %v300_v34 }
 0x145   :  { %v320_v36 = vsub.f32 0.0, %v301_v35 }
 0x147   :  { %v328_v37 = vmul.f32 1.442695, %v320_v36 }
 0x149   :  { %668 = vpow2.f32 %v328_v37 }
 0x14a   :  { %v302_v38 = vpop.f32.mrf.mxu1 }
 0x14b   :  { %v303_v39 = vadd.f32 %v838_v32, %v302_v38  ;;  %v635_v38 = vld [vmem:[%s881_s6] ss:$0 sm:$0xff] }
 0x14d   :  { %v321_v40 = vsub.f32 0.0, %v303_v39 }
 0x14f   :  { %v330_v41 = vmul.f32 1.442695, %v321_v40  ;;  %v669_v42 = vpop.eup %668 }
 0x150   :  { %v344_v45 = vadd.f32 1.0, %v669_v42 }
 0x151   :  { %670 = vpow2.f32 %v330_v41 }
 0x152   :  { %v305_v43 = vpop.f32.mrf.mxu1  ;;  %672 = vrcp.f32 %v344_v45 }
 0x153   :  { %v306_v44 = vadd.f32 %v838_v32, %v305_v43 }
 0x155   :  { %v322_v46 = vsub.f32 0.0, %v306_v44 }
 0x157   :  { %v671_v47 = vpop.eup %670  ;;  %v332_v48 = vmul.f32 1.442695, %v322_v46 }
 0x158   :  { %v345_v49 = vadd.f32 1.0, %v671_v47  ;;  %v673_v53 = vpop.eup %672 }
 0x159   :  { %v360_v57 = vmul.f32 %v673_v53, %v301_v35 }
 0x15a   :  { %674 = vrcp.f32 %v345_v49  ;;  %v307_v50 = vpop.f32.mrf.mxu1 }
 0x15b   :  { %676 = vpow2.f32 %v332_v48  ;;  %v308_v51 = vadd.f32 %v838_v32, %v307_v50 }
 0x15d   :  { %v323_v52 = vsub.f32 0.0, %v308_v51 }
 0x15f   :  { %v334_v54 = vmul.f32 1.442695, %v323_v52 }
 0x160   :  { %v675_v55 = vpop.eup %674 }
 0x161   :  { %v677_v56 = vpop.eup %676  ;;  %v361_v58 = vmul.f32 %v675_v55, %v303_v39  ;;  %678 = vpow2.f32 %v334_v54 }
 0x162   :  { %v310_v59 = vpop.f32.mrf.mxu1  ;;  %v346_v62 = vadd.f32 1.0, %v677_v56 }
 0x163   :  { %v311_v60 = vadd.f32 %v838_v32, %v310_v59  ;;  %v368_v61 = vpack.c.bf16 %v361_v58, %v360_v57 }
 0x164   :  { %680 = vrcp.f32 %v346_v62 }
 0x165   :  { %v324_v63 = vsub.f32 0.0, %v311_v60  ;;  %448 = vmatmul.bf16.vlgmr.msra.gmra.mxu2 %v368_v61 }
 0x167   :  { %v679_v0 = vpop.eup %678  ;;  %v336_v1 = vmul.f32 1.442695, %v324_v63 }
 0x168   :  { %v347_v2 = vadd.f32 1.0, %v679_v0 }
 0x16a   :  { %682 = vrcp.f32 %v347_v2  ;;  %v312_v3 = vpop.f32.mrf.mxu1  ;;  %v681_v6 = vpop.eup %680 }
 0x16b   :  { %684 = vpow2.f32 %v336_v1  ;;  %v313_v4 = vadd.f32 %v838_v32, %v312_v3  ;;  %v362_v10 = vmul.f32 %v681_v6, %v306_v44 }
 0x16d   :  { %v325_v5 = vsub.f32 0.0, %v313_v4 }
 0x16f   :  { %v338_v7 = vmul.f32 1.442695, %v325_v5 }
 0x170   :  { %v683_v8 = vpop.eup %682 }
 0x171   :  { %v685_v9 = vpop.eup %684  ;;  %v363_v11 = vmul.f32 %v683_v8, %v308_v51  ;;  %686 = vpow2.f32 %v338_v7 }
 0x172   :  { %v315_v12 = vpop.f32.mrf.mxu1  ;;  %v348_v15 = vadd.f32 1.0, %v685_v9 }
 0x173   :  { %v316_v13 = vadd.f32 %v838_v32, %v315_v12  ;;  %v369_v14 = vpack.c.bf16 %v363_v11, %v362_v10 }
 0x174   :  { %688 = vrcp.f32 %v348_v15 }
 0x175   :  { %v326_v16 = vsub.f32 0.0, %v316_v13  ;;  %453 = vmatmul.bf16.gmra.mxu2 %v369_v14 }
 0x177   :  { %v687_v17 = vpop.eup %686  ;;  %v340_v18 = vmul.f32 1.442695, %v326_v16 }
 0x178   :  { %v349_v19 = vadd.f32 1.0, %v687_v17 }
 0x17a   :  { %690 = vrcp.f32 %v349_v19  ;;  %v317_v20 = vpop.f32.mrf.mxu1  ;;  %v689_v23 = vpop.eup %688 }
 0x17b   :  { %692 = vpow2.f32 %v340_v18  ;;  %v318_v21 = vadd.f32 %v838_v32, %v317_v20  ;;  %v364_v27 = vmul.f32 %v689_v23, %v311_v60 }
 0x17d   :  { %v327_v22 = vsub.f32 0.0, %v318_v21 }
 0x17f   :  { %v342_v24 = vmul.f32 1.442695, %v327_v22 }
 0x180   :  { %v691_v25 = vpop.eup %690 }
 0x181   :  { %v693_v26 = vpop.eup %692  ;;  %v365_v28 = vmul.f32 %v691_v25, %v313_v4  ;;  %694 = vpow2.f32 %v342_v24 }
 0x182   :  { %v350_v30 = vadd.f32 1.0, %v693_v26 }
 0x183   :  { %v370_v29 = vpack.c.bf16 %v365_v28, %v364_v27 }
 0x184   :  { %696 = vrcp.f32 %v350_v30 }
 0x185   :  { %458 = vmatmul.bf16.gmra.mxu2 %v370_v29 }
 0x187   :  { %v695_v31 = vpop.eup %694 }
 0x188   :  { %v351_v33 = vadd.f32 1.0, %v695_v31 }
 0x18a   :  { %698 = vrcp.f32 %v351_v33  ;;  %v697_v34 = vpop.eup %696 }
 0x18b   :  { %v366_v36 = vmul.f32 %v697_v34, %v316_v13 }
 0x190   :  { %v699_v35 = vpop.eup %698 }
 0x191   :  { %v367_v37 = vmul.f32 %v699_v35, %v318_v21 }
 0x193   :  { %v371_v32 = vpack.c.bf16 %v367_v37, %v366_v36 }
 0x195   :  { %463 = vmatmul.bf16.gmra.mxu2 %v371_v32 }
 0x1e8   :  { %v449_v39 = vpop.f32.mrf.mxu2 }
 0x1e9   :  { %v450_v40 = vadd.f32 %v635_v38, %v449_v39 }
 0x1eb   :  { %469 = vst [vmem:[%s882_s7] sm:$0xff] %v450_v40 }
 0x1f0   :  { %v451_v41 = vpop.f32.mrf.mxu2 }
 0x1f1   :  { %v452_v42 = vadd.f32 %v635_v38, %v451_v41 }
 0x1f3   :  { %470 = vst [vmem:[%s882_s7 + $0x8] sm:$0xff] %v452_v42 }
 0x1f8   :  { %v454_v43 = vpop.f32.mrf.mxu2 }
 0x1f9   :  { %v455_v44 = vadd.f32 %v635_v38, %v454_v43 }
 0x1fb   :  { %471 = vst [vmem:[%s882_s7 + $0x10] sm:$0xff] %v455_v44 }
 0x200   :  { %v456_v45 = vpop.f32.mrf.mxu2 }
 0x201   :  { %v457_v46 = vadd.f32 %v635_v38, %v456_v45 }
 0x203   :  { %472 = vst [vmem:[%s882_s7 + $0x18] sm:$0xff] %v457_v46 }
 0x208   :  { %v459_v47 = vpop.f32.mrf.mxu2 }
 0x209   :  { %v460_v48 = vadd.f32 %v635_v38, %v459_v47 }
 0x20b   :  { %473 = vst [vmem:[%s882_s7 + $0x20] sm:$0xff] %v460_v48 }
 0x210   :  { %v461_v49 = vpop.f32.mrf.mxu2 }
 0x211   :  { %v462_v50 = vadd.f32 %v635_v38, %v461_v49 }
 0x213   :  { %474 = vst [vmem:[%s882_s7 + $0x28] sm:$0xff] %v462_v50 }
 0x218   :  { %v464_v51 = vpop.f32.mrf.mxu2 }
 0x219   :  { %v465_v52 = vadd.f32 %v635_v38, %v464_v51 }
 0x21b   :  { %475 = vst [vmem:[%s882_s7 + $0x30] sm:$0xff] %v465_v52 }
 0x220   :  { %v466_v53 = vpop.f32.mrf.mxu2 }
 0x221   :  { %v467_v54 = vadd.f32 %v635_v38, %v466_v53 }
 0x223   :  { %476 = vst [vmem:[%s882_s7 + $0x38] sm:$0xff] %v467_v54 }
 0x224   :  { %481 = vsyncpa [#allocation3], 1 }

</bundles_post_ra>
